<compile_context>
chip_gen: v5e
topology: v5e:2x2
jax: 0.10.0
libtpu: 0.0.40
codegen_flags: <defaults>
</compile_context>

<pallas_src>
import math

import jax
import jax.numpy as jnp
from jax import lax
from jax.experimental import pallas as pl
from jax.experimental.pallas import tpu as pltpu

_LN_EPS = 1e-5
_VMEM_BUDGET = 24 << 20          # per-step working set target; v7x-safe
_SINGLE_BLOCK_MAX = 2048         # below this, one block is best on every gen


def _gelu_exact(x):
    # PyTorch nn.GELU() default: exact erf-based GELU.
    return 0.5 * x * (1.0 + lax.erf(x * (1.0 / math.sqrt(2.0))))


def _round_up(x, m):
    return (x + m - 1) // m * m


def _per_row_vmem_bytes(E, out_itemsize):
    """Approx VMEM bytes per tile row: in/out tiles (double-buffered) + temps."""
    lane_e = _round_up(E, 128)
    return (2 * 128 * 4                    # packed (TB,8) input slab, lane-padded, x2 buffers
            + 2 * lane_e * out_itemsize    # output tile, x2 buffers
            + 6 * lane_e * 4)              # in-kernel f32 temporaries (c, t, y, d, d*d, out)


def _pick_row_tile(B, E, out_itemsize):
    """Rows per grid step, sized from the VMEM budget (not a fixed 512 cap)."""
    per_row = _per_row_vmem_bytes(E, out_itemsize)
    tb_cap = max(8, (_VMEM_BUDGET // per_row) // 8 * 8)
    if B <= _SINGLE_BLOCK_MAX:
        # Small/medium batch: one block (or as few as VMEM allows).
        return min(B, tb_cap)
    # Large batch: aim for >= 4 blocks so both v7x TensorCores get work
    # ("parallel" axis), but never drop below ~1024 rows per step so the
    # ~0.35 us per-step overhead stays amortized (no-op trade on v5e/v6e).
    tb = min(tb_cap, max(1024, _round_up(pl.cdiv(B, 4), 8)))
    return tb


def _vmem_limit_bytes(tb, E, out_itemsize):
    rows = _round_up(tb, 8)
    need = (rows * _per_row_vmem_bytes(E, out_itemsize)
            + 2 * 6 * 8 * _round_up(E, 128) * 4)      # resident weights/biases/gamma/beta
    # 25% headroom, capped at the default 32 MiB scoped limit (safe on v5e-v7x).
    return int(min(max(int(need * 1.25), 8 << 20), 32 << 20))


def _coords_embedding_0d_kernel(x_ref, wc_ref, bc_ref, wt_ref, bt_ref,
                                g_ref, beta_ref, o_ref):
    # x: (TB, 8) = [lat, lon_sin, lon_cos, landmask, dt, pad, pad, pad]
    x = x_ref[...].astype(jnp.float32)
    wc = wc_ref[...]                               # (4, E)

    # coords embedding: Linear(4, E) as 4 unrolled broadcast-FMAs (VPU, no MXU)
    c = bc_ref[...] + x[:, 0:1] * wc[0:1, :]
    c = c + x[:, 1:2] * wc[1:2, :]
    c = c + x[:, 2:3] * wc[2:3, :]
    c = c + x[:, 3:4] * wc[3:4, :]                 # landmask column
    c = _gelu_exact(c)

    # time embedding: Linear(1, E) == broadcast-FMA
    t = x[:, 4:5] * wt_ref[...] + bt_ref[...]

    y = c + t                                      # (TB, E)

    # LayerNorm over last dim (eps=1e-5, affine), stable two-pass form.
    inv_e = 1.0 / y.shape[-1]
    mean = jnp.sum(y, axis=-1, keepdims=True) * inv_e
    d = y - mean
    var = jnp.sum(d * d, axis=-1, keepdims=True) * inv_e
    inv = lax.rsqrt(var + _LN_EPS)
    o_ref[...] = (d * inv * g_ref[...] + beta_ref[...]).astype(o_ref.dtype)


def coords_embedding_0d(coords, landmask, dt, params, *, out_dtype=None,
                        row_tile=None):
    """coords: (B,3), landmask: (B,), dt: (B,). Returns (B, 1, E).

    out_dtype=jnp.bfloat16 halves HBM write traffic (output writes dominate);
    default keeps the input dtype so results match the f32 reference exactly.
    """
    B = coords.shape[0]
    E = params["wc"].shape[1]
    out_dtype = coords.dtype if out_dtype is None else out_dtype
    out_itemsize = jnp.dtype(out_dtype).itemsize
    f = coords.dtype

    # Pack coords | landmask | dt | pad into one (B, 8) slab: one input DMA and
    # one double-buffered VMEM buffer per step (concat cost ~32 B/row, negligible).
    x = jnp.concatenate(
        [coords,
         landmask.reshape(B, 1).astype(f),
         dt.reshape(B, 1).astype(f),
         jnp.zeros((B, 3), f)], axis=1)            # (B, 8)

    if row_tile is None:
        tb = _pick_row_tile(B, E, out_itemsize)
    else:
        tb = max(8, min(_round_up(row_tile, 8), B))

    grid = (pl.cdiv(B, tb),)                       # partial last block masked by Pallas

    def const_spec(rows):
        # Constant block index -> stays VMEM-resident, not re-DMA'd per step.
        return pl.BlockSpec((rows, E), lambda i: (0, 0))

    cost = pl.CostEstimate(
        flops=int(20 * B * E),
        transcendentals=int(B * E),
        bytes_accessed=int(B * (8 * 4 + E * out_itemsize) + 9 * E * 4),
    )

    out = pl.pallas_call(
        _coords_embedding_0d_kernel,
        out_shape=jax.ShapeDtypeStruct((B, E), out_dtype),
        grid=grid,
        in_specs=[
            pl.BlockSpec((tb, 8), lambda i: (i, 0)),   # packed coords/landmask/dt
            const_spec(4),     # wc
            const_spec(1),     # bc
            const_spec(1),     # wt
            const_spec(1),     # bt
            const_spec(1),     # gamma
            const_spec(1),     # beta
        ],
        out_specs=pl.BlockSpec((tb, E), lambda i: (i, 0)),
        compiler_params=pltpu.CompilerParams(
            dimension_semantics=("parallel",),
            vmem_limit_bytes=_vmem_limit_bytes(tb, E, out_itemsize),
        ),
        cost_estimate=cost,
    )(x, params["wc"], params["bc"], params["wt"], params["bt"],
      params["gamma"], params["beta"])

    return out[:, None, :]                         # (B, 1, E), metadata reshape only


def init_params(key, emb_dim):
    """Deterministic synthetic parameter init (shapes match the PyTorch module)."""
    k1, k2, k3, k4 = jax.random.split(key, 4)
    # coords_embedding.embedding : Linear(4, emb_dim)
    wc = jax.random.uniform(k1, (4, emb_dim), jnp.float32,
                            -1.0 / math.sqrt(4), 1.0 / math.sqrt(4))
    bc = jax.random.uniform(k2, (1, emb_dim), jnp.float32,
                            -1.0 / math.sqrt(4), 1.0 / math.sqrt(4))
    # time_embedding : Linear(1, emb_dim)
    wt = jax.random.uniform(k3, (1, emb_dim), jnp.float32, -1.0, 1.0)
    bt = jax.random.uniform(k4, (1, emb_dim), jnp.float32, -1.0, 1.0)
    # norm : LayerNorm(emb_dim)
    gamma = jnp.ones((1, emb_dim), jnp.float32)
    beta = jnp.zeros((1, emb_dim), jnp.float32)
    # TODO(synk): self.ff (Linear->GELU->Linear) is defined but unused in forward(); omitted.
    return {"wc": wc, "bc": bc, "wt": wt, "bt": bt, "gamma": gamma, "beta": beta}


def _reference(coords, landmask, dt, params):
    """Pure-JAX reference mirroring the PyTorch forward pass."""
    B = coords.shape[0]
    x4 = jnp.concatenate([coords, landmask[:, None]], axis=1)
    c = x4 @ params["wc"] + params["bc"]
    c = 0.5 * c * (1.0 + lax.erf(c / jnp.sqrt(2.0)))
    t = dt.reshape(B, 1) @ params["wt"] + params["bt"]
    y = c + t
    mean = jnp.mean(y, axis=-1, keepdims=True)
    var = jnp.mean((y - mean) ** 2, axis=-1, keepdims=True)
    y = (y - mean) * lax.rsqrt(var + _LN_EPS)
    y = y * params["gamma"] + params["beta"]
    return y[:, None, :]


if __name__ == "__main__":
    B, emb_dim = 16, 128       # emb_dim multiple of 128 -> lane-dense output stores
    key = jax.random.PRNGKey(0)
    kp, kc, kl, kd = jax.random.split(key, 4)

    params = init_params(kp, emb_dim)
    coords = jax.random.normal(kc, (B, 3), jnp.float32)
    landmask = (jax.random.uniform(kl, (B,), jnp.float32) > 0.5).astype(jnp.float32)
    dt = jax.random.normal(kd, (B,), jnp.float32)

    # f32 output path: must match the reference exactly.
    out = jax.block_until_ready(coords_embedding_0d(coords, landmask, dt, params))
    ref = _reference(coords, landmask, dt, params)
    assert out.shape == (B, 1, emb_dim), out.shape
    assert jnp.allclose(out, ref, atol=1e-4, rtol=1e-4), \
        float(jnp.max(jnp.abs(out - ref)))

    # Multi-block + ragged final block path (no pad / no out[:B] copy).
    B2 = 40
    kc2, kl2, kd2 = jax.random.split(jax.random.PRNGKey(1), 3)
    coords2 = jax.random.normal(kc2, (B2, 3), jnp.float32)
    landmask2 = (jax.random.uniform(kl2, (B2,), jnp.float32) > 0.5).astype(jnp.float32)
    dt2 = jax.random.normal(kd2, (B2,), jnp.float32)
    out2 = jax.block_until_ready(
        coords_embedding_0d(coords2, landmask2, dt2, params, row_tile=16))
    ref2 = _reference(coords2, landmask2, dt2, params)
    assert out2.shape == (B2, 1, emb_dim), out2.shape
    assert jnp.allclose(out2, ref2, atol=1e-4, rtol=1e-4), \
        float(jnp.max(jnp.abs(out2 - ref2)))

    # bf16 output path (halves HBM write traffic); looser tolerance vs f32 ref.
    out_bf16 = jax.block_until_ready(
        coords_embedding_0d(coords, landmask, dt, params, out_dtype=jnp.bfloat16))
    assert out_bf16.dtype == jnp.bfloat16
    assert jnp.allclose(out_bf16.astype(jnp.float32), ref, atol=3e-2, rtol=3e-2)

    print("KERNEL_OK")
</pallas_src>

<mosaic_0001>
module attributes {stable_mosaic.version = 11 : i64} {
  func.func @_coords_embedding_0d_kernel(%arg0: i32, %arg1: memref<16x8xf32, #tpu.memory_space<vmem>>, %arg2: memref<4x128xf32, #tpu.memory_space<vmem>>, %arg3: memref<1x128xf32, #tpu.memory_space<vmem>>, %arg4: memref<1x128xf32, #tpu.memory_space<vmem>>, %arg5: memref<1x128xf32, #tpu.memory_space<vmem>>, %arg6: memref<1x128xf32, #tpu.memory_space<vmem>>, %arg7: memref<1x128xf32, #tpu.memory_space<vmem>>, %arg8: memref<16x128xf32, #tpu.memory_space<vmem>>) attributes {dimension_semantics = [#tpu.dimension_semantics<parallel>], iteration_bounds = array<i64: 1>, scalar_prefetch = 0 : i64, scratch_operands = 0 : i64, tpu.core_type = #tpu.core_type<tc>, window_params = [{transform_indices = @transform_0, window_bounds = array<i64: 16, 8>}, {pipeline_mode = #tpu.pipeline_mode<synchronous>, transform_indices = @transform_1, window_bounds = array<i64: 4, 128>}, {pipeline_mode = #tpu.pipeline_mode<synchronous>, transform_indices = @transform_2, window_bounds = array<i64: 1, 128>}, {pipeline_mode = #tpu.pipeline_mode<synchronous>, transform_indices = @transform_3, window_bounds = array<i64: 1, 128>}, {pipeline_mode = #tpu.pipeline_mode<synchronous>, transform_indices = @transform_4, window_bounds = array<i64: 1, 128>}, {pipeline_mode = #tpu.pipeline_mode<synchronous>, transform_indices = @transform_5, window_bounds = array<i64: 1, 128>}, {pipeline_mode = #tpu.pipeline_mode<synchronous>, transform_indices = @transform_6, window_bounds = array<i64: 1, 128>}, {transform_indices = @transform_7, window_bounds = array<i64: 16, 128>}]} {
    %c0 = arith.constant 0 : index
    %c0_0 = arith.constant 0 : index
    %0 = vector.load %arg1[%c0, %c0_0] : memref<16x8xf32, #tpu.memory_space<vmem>>, vector<16x8xf32>
    %c0_1 = arith.constant 0 : index
    %c0_2 = arith.constant 0 : index
    %1 = vector.load %arg2[%c0_1, %c0_2] : memref<4x128xf32, #tpu.memory_space<vmem>>, vector<4x128xf32>
    %c0_3 = arith.constant 0 : index
    %c0_4 = arith.constant 0 : index
    %2 = vector.load %arg3[%c0_3, %c0_4] : memref<1x128xf32, #tpu.memory_space<vmem>>, vector<1x128xf32>
    %3 = vector.extract_strided_slice %0 {offsets = [0, 0], sizes = [16, 1], strides = [1, 1]} : vector<16x8xf32> to vector<16x1xf32>
    %4 = vector.extract_strided_slice %1 {offsets = [0, 0], sizes = [1, 128], strides = [1, 1]} : vector<4x128xf32> to vector<1x128xf32>
    %5 = vector.broadcast %3 : vector<16x1xf32> to vector<16x128xf32>
    %6 = vector.broadcast %4 : vector<1x128xf32> to vector<16x128xf32>
    %7 = arith.mulf %5, %6 : vector<16x128xf32>
    %8 = vector.broadcast %2 : vector<1x128xf32> to vector<16x128xf32>
    %9 = arith.addf %8, %7 : vector<16x128xf32>
    %10 = vector.extract_strided_slice %0 {offsets = [0, 1], sizes = [16, 1], strides = [1, 1]} : vector<16x8xf32> to vector<16x1xf32>
    %11 = vector.extract_strided_slice %1 {offsets = [1, 0], sizes = [1, 128], strides = [1, 1]} : vector<4x128xf32> to vector<1x128xf32>
    %12 = vector.broadcast %10 : vector<16x1xf32> to vector<16x128xf32>
    %13 = vector.broadcast %11 : vector<1x128xf32> to vector<16x128xf32>
    %14 = arith.mulf %12, %13 : vector<16x128xf32>
    %15 = arith.addf %9, %14 : vector<16x128xf32>
    %16 = vector.extract_strided_slice %0 {offsets = [0, 2], sizes = [16, 1], strides = [1, 1]} : vector<16x8xf32> to vector<16x1xf32>
    %17 = vector.extract_strided_slice %1 {offsets = [2, 0], sizes = [1, 128], strides = [1, 1]} : vector<4x128xf32> to vector<1x128xf32>
    %18 = vector.broadcast %16 : vector<16x1xf32> to vector<16x128xf32>
    %19 = vector.broadcast %17 : vector<1x128xf32> to vector<16x128xf32>
    %20 = arith.mulf %18, %19 : vector<16x128xf32>
    %21 = arith.addf %15, %20 : vector<16x128xf32>
    %22 = vector.extract_strided_slice %0 {offsets = [0, 3], sizes = [16, 1], strides = [1, 1]} : vector<16x8xf32> to vector<16x1xf32>
    %23 = vector.extract_strided_slice %1 {offsets = [3, 0], sizes = [1, 128], strides = [1, 1]} : vector<4x128xf32> to vector<1x128xf32>
    %24 = vector.broadcast %22 : vector<16x1xf32> to vector<16x128xf32>
    %25 = vector.broadcast %23 : vector<1x128xf32> to vector<16x128xf32>
    %26 = arith.mulf %24, %25 : vector<16x128xf32>
    %27 = arith.addf %21, %26 : vector<16x128xf32>
    %cst = arith.constant 5.000000e-01 : f32
    %28 = vector.broadcast %cst : f32 to vector<16x128xf32>
    %29 = arith.mulf %28, %27 : vector<16x128xf32>
    %cst_5 = arith.constant 0.707106769 : f32
    %30 = vector.broadcast %cst_5 : f32 to vector<16x128xf32>
    %31 = arith.mulf %27, %30 : vector<16x128xf32>
    %32 = math.erf %31 : vector<16x128xf32>
    %cst_6 = arith.constant 1.000000e+00 : f32
    %33 = vector.broadcast %cst_6 : f32 to vector<16x128xf32>
    %34 = arith.addf %33, %32 : vector<16x128xf32>
    %35 = arith.mulf %29, %34 : vector<16x128xf32>
    %36 = vector.extract_strided_slice %0 {offsets = [0, 4], sizes = [16, 1], strides = [1, 1]} : vector<16x8xf32> to vector<16x1xf32>
    %c0_7 = arith.constant 0 : index
    %c0_8 = arith.constant 0 : index
    %37 = vector.load %arg4[%c0_7, %c0_8] : memref<1x128xf32, #tpu.memory_space<vmem>>, vector<1x128xf32>
    %38 = vector.broadcast %36 : vector<16x1xf32> to vector<16x128xf32>
    %39 = vector.broadcast %37 : vector<1x128xf32> to vector<16x128xf32>
    %40 = arith.mulf %38, %39 : vector<16x128xf32>
    %c0_9 = arith.constant 0 : index
    %c0_10 = arith.constant 0 : index
    %41 = vector.load %arg5[%c0_9, %c0_10] : memref<1x128xf32, #tpu.memory_space<vmem>>, vector<1x128xf32>
    %42 = vector.broadcast %41 : vector<1x128xf32> to vector<16x128xf32>
    %43 = arith.addf %40, %42 : vector<16x128xf32>
    %44 = arith.addf %35, %43 : vector<16x128xf32>
    %cst_11 = arith.constant dense<0.000000e+00> : vector<16xf32>
    %45 = vector.multi_reduction <add>, %44, %cst_11 [1] : vector<16x128xf32> to vector<16xf32>
    %46 = vector.shape_cast %45 : vector<16xf32> to vector<16x1xf32>
    %cst_12 = arith.constant 7.812500e-03 : f32
    %47 = vector.broadcast %cst_12 : f32 to vector<16x1xf32>
    %48 = arith.mulf %46, %47 : vector<16x1xf32>
    %49 = vector.broadcast %48 : vector<16x1xf32> to vector<16x128xf32>
    %50 = arith.subf %44, %49 : vector<16x128xf32>
    %51 = arith.mulf %50, %50 : vector<16x128xf32>
    %cst_13 = arith.constant dense<0.000000e+00> : vector<16xf32>
    %52 = vector.multi_reduction <add>, %51, %cst_13 [1] : vector<16x128xf32> to vector<16xf32>
    %53 = vector.shape_cast %52 : vector<16xf32> to vector<16x1xf32>
    %cst_14 = arith.constant 7.812500e-03 : f32
    %54 = vector.broadcast %cst_14 : f32 to vector<16x1xf32>
    %55 = arith.mulf %53, %54 : vector<16x1xf32>
    %cst_15 = arith.constant 9.99999974E-6 : f32
    %56 = vector.broadcast %cst_15 : f32 to vector<16x1xf32>
    %57 = arith.addf %55, %56 : vector<16x1xf32>
    %58 = math.rsqrt %57 : vector<16x1xf32>
    %59 = vector.broadcast %58 : vector<16x1xf32> to vector<16x128xf32>
    %60 = arith.mulf %50, %59 : vector<16x128xf32>
    %c0_16 = arith.constant 0 : index
    %c0_17 = arith.constant 0 : index
    %61 = vector.load %arg6[%c0_16, %c0_17] : memref<1x128xf32, #tpu.memory_space<vmem>>, vector<1x128xf32>
    %62 = vector.broadcast %61 : vector<1x128xf32> to vector<16x128xf32>
    %63 = arith.mulf %60, %62 : vector<16x128xf32>
    %c0_18 = arith.constant 0 : index
    %c0_19 = arith.constant 0 : index
    %64 = vector.load %arg7[%c0_18, %c0_19] : memref<1x128xf32, #tpu.memory_space<vmem>>, vector<1x128xf32>
    %65 = vector.broadcast %64 : vector<1x128xf32> to vector<16x128xf32>
    %66 = arith.addf %63, %65 : vector<16x128xf32>
    %c0_20 = arith.constant 0 : index
    %c0_21 = arith.constant 0 : index
    %67 = vector.load %arg8[%c0_20, %c0_21] : memref<16x128xf32, #tpu.memory_space<vmem>>, vector<16x128xf32>
    tpu.vector_store %arg8[%c0_20, %c0_21], %66 {strides = array<i32>} : memref<16x128xf32, #tpu.memory_space<vmem>>, vector<16x128xf32>,
    return
  }
  func.func @transform_0(%arg0: i32) -> (i32, i32) {
    %c0_i32 = arith.constant 0 : i32
    %c0_i32_0 = arith.constant 0 : i32
    return %arg0, %c0_i32 : i32, i32
  }
  func.func @transform_1(%arg0: i32) -> (i32, i32) {
    %c0_i32 = arith.constant 0 : i32
    %c0_i32_0 = arith.constant 0 : i32
    %c0_i32_1 = arith.constant 0 : i32
    return %c0_i32, %c0_i32_0 : i32, i32
  }
  func.func @transform_2(%arg0: i32) -> (i32, i32) {
    %c0_i32 = arith.constant 0 : i32
    %c0_i32_0 = arith.constant 0 : i32
    %c0_i32_1 = arith.constant 0 : i32
    return %c0_i32, %c0_i32_0 : i32, i32
  }
  func.func @transform_3(%arg0: i32) -> (i32, i32) {
    %c0_i32 = arith.constant 0 : i32
    %c0_i32_0 = arith.constant 0 : i32
    %c0_i32_1 = arith.constant 0 : i32
    return %c0_i32, %c0_i32_0 : i32, i32
  }
  func.func @transform_4(%arg0: i32) -> (i32, i32) {
    %c0_i32 = arith.constant 0 : i32
    %c0_i32_0 = arith.constant 0 : i32
    %c0_i32_1 = arith.constant 0 : i32
    return %c0_i32, %c0_i32_0 : i32, i32
  }
  func.func @transform_5(%arg0: i32) -> (i32, i32) {
    %c0_i32 = arith.constant 0 : i32
    %c0_i32_0 = arith.constant 0 : i32
    %c0_i32_1 = arith.constant 0 : i32
    return %c0_i32, %c0_i32_0 : i32, i32
  }
  func.func @transform_6(%arg0: i32) -> (i32, i32) {
    %c0_i32 = arith.constant 0 : i32
    %c0_i32_0 = arith.constant 0 : i32
    %c0_i32_1 = arith.constant 0 : i32
    return %c0_i32, %c0_i32_0 : i32, i32
  }
  func.func @transform_7(%arg0: i32) -> (i32, i32) {
    %c0_i32 = arith.constant 0 : i32
    %c0_i32_0 = arith.constant 0 : i32
    return %arg0, %c0_i32 : i32, i32
  }
}

</mosaic_0001>

<bundles_post_ra>
// kernel: tpu_custom_call.1
= control target key start
LH: loop header
LB: loop body
LE: loop exit
PB: predicated region body
PF: predicated region fallthrough
CT: control target
= control target key end

     0   :  { %v327_v1 = vmov 1   ;;  %v328_v2 = vmov 0   ;;  %v329_v3 = vmov 2   ;;  %s420_s0 = inlined_call_operand.vmem [shape: f32[16,8], index: 0, kind: input, shape index: {}]   ;;  %s421_s1 = inlined_call_operand.vmem [shape: f32[4,128], index: 1, kind: input, shape index: {}]   ;;  %s422_s2 = inlined_call_operand.vmem [shape: f32[1,128], index: 2, kind: input, shape index: {}]   ;;  %s423_s3 = inlined_call_operand.vmem [shape: f32[1,128], index: 3, kind: input, shape index: {}]   ;;  %s424_s4 = inlined_call_operand.vmem [shape: f32[1,128], index: 4, kind: input, shape index: {}]   ;;  %s425_s5 = inlined_call_operand.vmem [shape: f32[1,128], index: 5, kind: input, shape index: {}]   ;;  %s426_s6 = inlined_call_operand.vmem [shape: f32[1,128], index: 6, kind: input, shape index: {}]   ;;  %s427_s7 = inlined_call_operand.hbm [shape: f32[16,128], index: 7, kind: output, shape index: {}]  }
   0x1   :  { %v27_v0 = vld [vmem:[%s420_s0] sm:$0xff]  ;;  %281 = vset.pattern.permute.xlu1 %v327_v1  ;;  %280 = vset.pattern.permute.xlu0 %v328_v2 }
   0x2   :  { %50 = vperm.xlu1 %281, %v27_v0   ;;  %33 = vperm.xlu0 %280, %v27_v0  }
   0x3   :  { %282 = vset.pattern.permute.xlu2 %v329_v3 }
   0x4   :  { %12 = vsyncpa [#allocation3], 0  ;;  %63 = vperm.xlu2 %282, %v27_v0   ;;  %v28_v4 = vld [vmem:[%s420_s0 + $0x8] sm:$0xff]  ;;  %v330_v5 = vmov 3   ;;  %v331_v6 = vmov 4   ;;  %s332_s12 = smov [#allocation2]  }
   0x5   :  { %v29_v7 = vld [vmem:[%s421_s1] sm:$0xf]  ;;  %s256_s13 = sshll.u32 %s332_s12, 4  ;;  %s258_s16 = sshll.u32 %s427_s7, 4  ;;  %s257_s13 = int_to_ptr.vmem [resolvable:$true] %s256_s13  ;;  %s259_s16 = int_to_ptr.hbm [resolvable:$true] %s258_s16 }
   0x6   :  { %v41_v10 = vperm.slane %v29_v7, 0  ;;  %v288_v12 = vld [vmem:[%s422_s2] ss:$0 sm:$0xff]  ;;  %v57_v14 = vperm.slane %v29_v7, 1  ;;  %v70_v18 = vperm.slane %v29_v7, 2  ;;  %v83_v27 = vperm.slane %v29_v7, 3 }
   0x7   :  { %s334_s17 = smov 8  }
   0xa   :  { %54 = vperm.xlu1 %281, %v28_v4   ;;  %38 = vperm.xlu0 %280, %v28_v4  }
   0xc   :  { %67 = vperm.xlu2 %282, %v28_v4  }
  0x12   :  { %284 = vset.pattern.permute.xlu1 %v330_v5  ;;  %283 = vset.pattern.permute.xlu0 %v330_v5 }
  0x13   :  { %80 = vperm.xlu1 %284, %v28_v4   ;;  %76 = vperm.xlu0 %283, %v27_v0  }
  0x14   :  { %285 = vset.pattern.permute.xlu2 %v331_v6 }
  0x15   :  { %178 = vperm.xlu2 %285, %v27_v0  }
  0x1b   :  { %286 = vset.pattern.permute.xlu1 %v331_v6  ;;  %287 = vset.pattern.permute.xlu0 %v331_v6 }
  0x1c   :  { %182 = vperm.xlu1 %286, %v28_v4  }
  0x5e   :  { %v64_v11 = vpop.permute.xlu2 %63 }
  0x5f   :  { %v71_v24 = vmul.f32 %v70_v18, %v64_v11 }
  0x66   :  { %v68_v23 = vpop.permute.xlu2 %67 }
  0x67   :  { %v72_v28 = vmul.f32 %v70_v18, %v68_v23 }
  0x74   :  { %v51_v8 = vpop.permute.xlu1 %50  ;;  %v34_v9 = vpop.permute.xlu0 %33 }
  0x75   :  { %v42_v13 = vmul.f32 %v41_v10, %v34_v9  ;;  %v58_v21 = vmul.f32 %v57_v14, %v51_v8 }
  0x77   :  { %v47_v19 = vadd.f32 %v288_v12, %v42_v13 }
  0x79   :  { %v60_v25 = vadd.f32 %v58_v21, %v47_v19 }
  0x7b   :  { %v73_v33 = vadd.f32 %v71_v24, %v60_v25 }
  0x7c   :  { %v55_v15 = vpop.permute.xlu1 %54  ;;  %v39_v16 = vpop.permute.xlu0 %38 }
  0x7d   :  { %v43_v17 = vmul.f32 %v41_v10, %v39_v16  ;;  %v59_v22 = vmul.f32 %v57_v14, %v55_v15 }
  0x7f   :  { %v48_v20 = vadd.f32 %v288_v12, %v43_v17 }
  0x81   :  { %v61_v26 = vadd.f32 %v59_v22, %v48_v20 }
  0x83   :  { %v74_v31 = vadd.f32 %v72_v28, %v61_v26 }
  0x85   :  { %v81_v29 = vpop.permute.xlu1 %80  ;;  %v77_v30 = vpop.permute.xlu0 %76 }
  0x86   :  { %v85_v32 = vmul.f32 %v83_v27, %v81_v29  ;;  %v84_v34 = vmul.f32 %v83_v27, %v77_v30 }
  0x88   :  { %v387_v35 = vadd.f32 %v85_v32, %v74_v31  ;;  %v389_v36 = vadd.f32 %v84_v34, %v73_v33  ;;  %v289_v31 = vld [vmem:[%s423_s3] ss:$0 sm:$0xff] }
  0x8a   :  { %v392_v37 = vmul.f32 0.70710677, %v387_v35  ;;  %v395_v38 = vmul.f32 0.70710677, %v389_v36 }
  0x8c   :  { %v132_v39 = vmul.f32 %v392_v37, %v392_v37  ;;  %v92_v40 = vmul.f32 %v395_v38, %v395_v38 }
  0x8e   :  { %v133_v41 = vmin.f32 %v132_v39, 16.0  ;;  %v93_v42 = vmin.f32 %v92_v40, 16.0  ;;  %v183_v33 = vpop.permute.xlu1 %182 }
  0x90   :  { %v134_v43 = vmul.f32 2.1237322e-06, %v133_v41  ;;  %v94_v44 = vmul.f32 2.1237322e-06, %v93_v42  ;;  %v145_v45 = vmul.f32 3.8918573e-05, %v133_v41 }
  0x91   :  { %v105_v46 = vmul.f32 3.8918573e-05, %v93_v42 }
  0x92   :  { %v135_v47 = vadd.f32 0.00028619796, %v134_v43  ;;  %v95_v48 = vadd.f32 0.00028619796, %v94_v44  ;;  %v146_v49 = vadd.f32 0.001143296, %v145_v45 }
  0x93   :  { %v106_v50 = vadd.f32 0.001143296, %v105_v46 }
  0x94   :  { %v136_v51 = vmul.f32 %v135_v47, %v133_v41  ;;  %v96_v52 = vmul.f32 %v95_v48, %v93_v42  ;;  %v147_v53 = vmul.f32 %v146_v49, %v133_v41  ;;  %v290_v47 = vld [vmem:[%s424_s4] ss:$0 sm:$0xff]  ;;  %v189_v48 = vmul.f32 %v289_v31, %v183_v33 }
  0x95   :  { %v107_v54 = vmul.f32 %v106_v50, %v93_v42 }
  0x96   :  { %v137_v55 = vadd.f32 0.0036580483, %v136_v51  ;;  %v148_v56 = vadd.f32 0.014752088, %v147_v53  ;;  %v97_v58 = vadd.f32 0.0036580483, %v96_v52 }
  0x97   :  { %v108_v57 = vadd.f32 0.014752088, %v107_v54  ;;  %v89_v54 = vmul.f32 0.5, %v387_v35 }
  0x98   :  { %v149_v59 = vmul.f32 %v148_v56, %v133_v41  ;;  %v138_v61 = vmul.f32 %v137_v55, %v133_v41  ;;  %v98_v0 = vmul.f32 %v97_v58, %v93_v42  ;;  %v195_v55 = vadd.f32 %v290_v47, %v189_v48 }
  0x99   :  { %v109_v60 = vmul.f32 %v108_v57, %v93_v42 }
  0x9a   :  { %v150_v62 = vadd.f32 0.112945676, %v149_v59  ;;  %v139_v3 = vadd.f32 0.05243302, %v138_v61  ;;  %v99_v6 = vadd.f32 0.05243302, %v98_v0 }
  0x9b   :  { %v110_v63 = vadd.f32 0.112945676, %v109_v60 }
  0x9c   :  { %v151_v1 = vmul.f32 %v150_v62, %v133_v41  ;;  %v140_v9 = vmul.f32 %v139_v3, %v133_v41  ;;  %v100_v12 = vmul.f32 %v99_v6, %v93_v42 }
  0x9d   :  { %v111_v2 = vmul.f32 %v110_v63, %v93_v42 }
  0x9e   :  { %v152_v4 = vadd.f32 0.4994258, %v151_v1  ;;  %v141_v13 = vadd.f32 0.18741608, %v140_v9  ;;  %v101_v14 = vadd.f32 0.18741608, %v100_v12 }
  0x9f   :  { %v112_v5 = vadd.f32 0.4994258, %v111_v2 }
  0xa0   :  { %v153_v7 = vmul.f32 %v152_v4, %v133_v41  ;;  %v142_v16 = vmul.f32 %v141_v13, %v133_v41  ;;  %v102_v19 = vmul.f32 %v101_v14, %v93_v42  ;;  %v179_v41 = vpop.permute.xlu2 %178 }
  0xa1   :  { %v113_v8 = vmul.f32 %v112_v5, %v93_v42  ;;  %v188_v51 = vmul.f32 %v289_v31, %v179_v41 }
  0xa2   :  { %v154_v10 = vadd.f32 1.0, %v153_v7  ;;  %v143_v22 = vadd.f32 1.1283791, %v142_v16  ;;  %v103_v28 = vadd.f32 1.1283791, %v102_v19 }
  0xa3   :  { %v114_v11 = vadd.f32 1.0, %v113_v8  ;;  %v194_v57 = vadd.f32 %v290_v47, %v188_v51 }
  0xa4   :  { %293 = vrcp.f32 %v154_v10  ;;  %v166_v23 = vand.u32 2147483648, %v154_v10  ;;  %v164_v26 = vand.u32 2147483647, %v154_v10  ;;  %vm160_vm2 = vweird.f32 %v154_v10 }
  0xa5   :  { %295 = vrcp.f32 %v114_v11  ;;  %v126_v27 = vand.u32 2147483648, %v114_v11  ;;  %v124_v30 = vand.u32 2147483647, %v114_v11  ;;  %vm120_vm4 = vweird.f32 %v114_v11 }
  0xa6   :  { %v167_v34 = vor.u32 1.1754944e-38, %v166_v23  ;;  %v144_v40 = vmul.f32 %v143_v22, %v392_v37  ;;  %vm165_vm5 = vcmp.eq.f32.partialorder %v164_v26, 8.507059e+37  ;;  %v104_v44 = vmul.f32 %v103_v28, %v395_v38  ;;  %v291_v22 = vld [vmem:[%s425_s5] ss:$0 sm:$0xff]  ;;  %s333_s5 = smov 128  }
  0xa7   :  { %v127_v43 = vor.u32 1.1754944e-38, %v126_v27  ;;  %vm125_vm7 = vcmp.eq.f32.partialorder %v124_v30, 8.507059e+37  ;;  %v88_v38 = vmul.f32 0.5, %v389_v36  ;;  %v292_v27 = vld [vmem:[%s426_s6] ss:$0 sm:$0xff] }
  0xaa   :  { %v294_v15 = vpop.eup %293 }
  0xab   :  { %v296_v17 = vpop.eup %295  ;;  %v156_v18 = vmul.f32 %v294_v15, %v154_v10  ;;  %vm161_vm0 = vweird.f32 %v294_v15 }
  0xac   :  { %v116_v20 = vmul.f32 %v296_v17, %v114_v11  ;;  %vm121_vm1 = vweird.f32 %v296_v17  ;;  %vm162_vm3 = vmor %vm160_vm2, %vm161_vm0 }
  0xad   :  { %v157_v21 = vsub.f32 1.0, %v156_v18  ;;  %vm122_vm6 = vmor %vm120_vm4, %vm121_vm1 }
  0xae   :  { %v117_v24 = vsub.f32 1.0, %v116_v20 }
  0xaf   :  { %v158_v25 = vmul.f32 %v294_v15, %v157_v21 }
  0xb0   :  { %v118_v29 = vmul.f32 %v296_v17, %v117_v24 }
  0xb1   :  { %v159_v32 = vadd.f32 %v294_v15, %v158_v25 }
  0xb2   :  { %v119_v39 = vadd.f32 %v296_v17, %v118_v29 }
  0xb3   :  { %v163_v42 = vsel %vm162_vm3, %v294_v15, %v159_v32 }
  0xb4   :  { %v168_v45 = vsel %vm165_vm5, %v167_v34, %v163_v42  ;;  %v123_v46 = vsel %vm122_vm6, %v296_v17, %v119_v39 }
  0xb5   :  { %v169_v49 = vmul.f32 %v168_v45, %v144_v40  ;;  %v128_v50 = vsel %vm125_vm7, %v127_v43, %v123_v46 }
  0xb6   :  { %v129_v52 = vmul.f32 %v128_v50, %v104_v44 }
  0xb7   :  { %v271_v37 = vclamps-f32 %v169_v49, 1.0 }
  0xb8   :  { %v270_v53 = vclamps-f32 %v129_v52, 1.0 }
  0xb9   :  { %v173_v56 = vadd.f32 1.0, %v271_v37 }
  0xba   :  { %v172_v58 = vadd.f32 1.0, %v270_v53 }
  0xbb   :  { %v175_v59 = vmul.f32 %v173_v56, %v89_v54 }
  0xbc   :  { %v174_v60 = vmul.f32 %v172_v58, %v88_v38 }
  0xbd   :  { %v197_v61 = vadd.f32 %v195_v55, %v175_v59 }
  0xbe   :  { %v196_v62 = vadd.f32 %v194_v57, %v174_v60 }
  0xbf   :  { %200 = vadd.xlane.f32.xlu0 %v197_v61 }
  0xc0   :  { %198 = vadd.xlane.f32.xlu2 %v196_v62 }
 0x132   :  { %v201_v63 = vpop.xlane.xlu0 %200 }
 0x133   :  { %v199_v0 = vpop.xlane.xlu2 %198  ;;  %v203_v1 = vmul.f32 0.0078125, %v201_v63 }
 0x134   :  { %v202_v2 = vmul.f32 0.0078125, %v199_v0 }
 0x135   :  { %v205_v3 = vsub.f32 %v197_v61, %v203_v1 }
 0x136   :  { %v204_v4 = vsub.f32 %v196_v62, %v202_v2 }
 0x137   :  { %v207_v5 = vmul.f32 %v205_v3, %v205_v3 }
 0x138   :  { %v206_v35 = vmul.f32 %v204_v4, %v204_v4 }
 0x139   :  { %210 = vadd.xlane.f32.xlu2 %v207_v5 }
 0x13a   :  { %208 = vadd.xlane.f32.xlu1 %v206_v35 }
 0x1ac   :  { %v211_v6 = vpop.xlane.xlu2 %210 }
 0x1ad   :  { %v209_v36 = vpop.xlane.xlu1 %208  ;;  %v213_v7 = vmul.f32 0.0078125, %v211_v6 }
 0x1ae   :  { %v212_v8 = vmul.f32 0.0078125, %v209_v36 }
 0x1af   :  { %v215_v9 = vadd.f32 1e-05, %v213_v7 }
 0x1b0   :  { %v214_v10 = vadd.f32 1e-05, %v212_v8 }
 0x1b1   :  { %297 = vrsqrt.f32 %v215_v9  ;;  %vm232_vm10 = vweird.f32 %v215_v9 }
 0x1b2   :  { %299 = vrsqrt.f32 %v214_v10  ;;  %vm222_vm11 = vweird.f32 %v214_v10 }
 0x1b7   :  { %v298_v11 = vpop.eup %297 }
 0x1b8   :  { %v300_v12 = vpop.eup %299  ;;  %v227_v13 = vmul.f32 %v298_v11, %v215_v9  ;;  %vm233_vm8 = vweird.f32 %v298_v11 }
 0x1b9   :  { %v217_v14 = vmul.f32 %v300_v12, %v214_v10  ;;  %vm223_vm9 = vweird.f32 %v300_v12  ;;  %vm234_vm12 = vmor %vm232_vm10, %vm233_vm8 }
 0x1ba   :  { %v228_v15 = vmul.f32 %v298_v11, %v227_v13  ;;  %vm224_vm13 = vmor %vm222_vm11, %vm223_vm9 }
 0x1bb   :  { %v218_v16 = vmul.f32 %v300_v12, %v217_v14 }
 0x1bc   :  { %v229_v17 = vmul.f32 0.5, %v228_v15 }
 0x1bd   :  { %v219_v18 = vmul.f32 0.5, %v218_v16 }
 0x1be   :  { %v230_v19 = vsub.f32 1.5, %v229_v17 }
 0x1bf   :  { %v220_v20 = vsub.f32 1.5, %v219_v18 }
 0x1c0   :  { %v231_v21 = vmul.f32 %v298_v11, %v230_v19 }
 0x1c1   :  { %v221_v23 = vmul.f32 %v300_v12, %v220_v20 }
 0x1c2   :  { %v235_v24 = vsel %vm234_vm12, %v298_v11, %v231_v21 }
 0x1c3   :  { %v225_v25 = vsel %vm224_vm13, %v300_v12, %v221_v23  ;;  %v237_v26 = vmul.f32 %v235_v24, %v205_v3 }
 0x1c4   :  { %v236_v28 = vmul.f32 %v225_v25, %v204_v4 }
 0x1c5   :  { %v243_v29 = vmul.f32 %v291_v22, %v237_v26 }
 0x1c6   :  { %v242_v30 = vmul.f32 %v291_v22, %v236_v28 }
 0x1c7   :  { %v249_v31 = vadd.f32 %v292_v27, %v243_v29 }
 0x1c8   :  { %v248_v32 = vadd.f32 %v292_v27, %v242_v30 }
 0x1c9   :  { %251 = vst [vmem:[#allocation2 + $0x8] sm:$0xff] %v249_v31 }
 0x1ca   :  { %250 = vst [vmem:[#allocation2] sm:$0xff] %v248_v32 }
 0x1cb   :  { %264 = dma.vmem_to_hbm [thread:$0]  %s257_s13, 256, %s259_s16, [#allocation3], %s333_s5, %s333_s5, %s334_s17  }
 0x1cc   :  { %325 = dma.done.wait [#allocation3], 256  }
 0x1cd   :  { %326 = vsyncadd [#allocation3], 4294967040 }
 0x1ce   :  { %269 = vsyncpa [#allocation3], 1 }

</bundles_post_ra>
